<compile_context>
chip_gen: v5e
topology: v5e:2x2
jax: 0.10.0
libtpu: 0.0.40
codegen_flags: <defaults>
</compile_context>

<pallas_src>
import functools

import jax
import jax.numpy as jnp
from jax.experimental import pallas as pl
from jax.experimental.pallas import tpu as pltpu

ALPHA = 0.25
GAMMA = 2.0  # GAMMA == 2 lets us use a square instead of a pow
LANES = 128
SUBLANES = 8
MAX_ROW_TILE = 1024  # 1024 x 128 x 4 B = 512 KiB per input block


def _focal_loss_kernel(x_ref, t_ref, o_ref, acc_ref, *, scale):
    i = pl.program_id(0)

    @pl.when(i == 0)
    def _():
        acc_ref[...] = jnp.zeros_like(acc_ref)

    x = x_ref[...].astype(jnp.float32)
    t = t_ref[...].astype(jnp.float32)

    # Numerically-stable BCE with logits (matches F.binary_cross_entropy_with_logits):
    #   loss = max(x, 0) - x * t + log(1 + exp(-|x|))
    bce = jnp.maximum(x, 0.0) - x * t + jnp.log1p(jnp.exp(-jnp.abs(x)))
    pt = jnp.exp(-bce)
    u = 1.0 - pt
    focal = u * u * bce  # gamma == 2 -> square; alpha folded into final scale

    # Partially reduce the (row_tile, 128) tile into a single vreg-shaped (8, 128)
    # accumulator: elementwise VPU adds only, no per-step XLU reduction.
    rt = focal.shape[0]
    acc_ref[...] += focal.reshape(rt // SUBLANES, SUBLANES, LANES).sum(axis=0)

    @pl.when(i == pl.num_programs(0) - 1)
    def _():
        # Single cross-lane/sublane reduce + scaling at the very end.
        o_ref[...] = jnp.sum(acc_ref[...], keepdims=True) * scale


def _pick_row_tile(rows):
    """Largest multiple-of-8 divisor of `rows` not exceeding MAX_ROW_TILE."""
    t = min(rows, MAX_ROW_TILE)
    t = (t // SUBLANES) * SUBLANES
    for cand in range(t, 0, -SUBLANES):
        if rows % cand == 0:
            return cand
    return SUBLANES


def focal_loss_mean(inputs, targets):
    """Focal loss with reduction='mean', computed in a Pallas TPU kernel.

    inputs, targets: arrays of identical shape (any rank); total element count
    must be a multiple of 8 * 128 = 1024 (pad on the caller side otherwise).
    """
    assert inputs.shape == targets.shape
    total = inputs.size
    assert total % (SUBLANES * LANES) == 0, (
        "element count must be a multiple of 1024 (8 sublanes x 128 lanes)"
    )
    rows = total // LANES

    # No wrapper-side upcast: keep native dtype on the HBM side, upcast in-kernel.
    x2d = inputs.reshape(rows, LANES)
    t2d = targets.reshape(rows, LANES)

    row_tile = _pick_row_tile(rows)
    grid = (rows // row_tile,)

    kernel = functools.partial(_focal_loss_kernel, scale=ALPHA / float(total))

    out = pl.pallas_call(
        kernel,
        out_shape=jax.ShapeDtypeStruct((1, 1), jnp.float32),
        grid_spec=pltpu.PrefetchScalarGridSpec(
            num_scalar_prefetch=0,
            grid=grid,
            in_specs=[
                pl.BlockSpec((row_tile, LANES), lambda i: (i, 0)),
                pl.BlockSpec((row_tile, LANES), lambda i: (i, 0)),
            ],
            out_specs=pl.BlockSpec((1, 1), lambda i: (0, 0)),
            scratch_shapes=[pltpu.VMEM((SUBLANES, LANES), jnp.float32)],
        ),
        compiler_params=pltpu.CompilerParams(
            dimension_semantics=("arbitrary",),
        ),
    )(x2d, t2d)
    return out[0, 0]


def _reference_focal_loss_mean(inputs, targets):
    x = inputs.astype(jnp.float32)
    t = targets.astype(jnp.float32)
    bce = jnp.maximum(x, 0.0) - x * t + jnp.log1p(jnp.exp(-jnp.abs(x)))
    pt = jnp.exp(-bce)
    focal = ALPHA * (1.0 - pt) ** GAMMA * bce
    return jnp.mean(focal)


if __name__ == "__main__":
    key = jax.random.PRNGKey(0)
    k1, k2 = jax.random.split(key)

    # NCHW-style shape, consistent with a typical segmentation-logit use of FocalLoss.
    shape = (2, 4, 16, 16)  # 2048 elements = 16 rows x 128 lanes
    logits = jax.random.normal(k1, shape, dtype=jnp.float32)
    targets = jax.random.bernoulli(k2, 0.3, shape).astype(jnp.float32)

    loss = focal_loss_mean(logits, targets)
    loss = jax.block_until_ready(loss)

    ref = _reference_focal_loss_mean(logits, targets)
    assert jnp.allclose(loss, ref, rtol=1e-5, atol=1e-6), (loss, ref)

    print("KERNEL_OK")
</pallas_src>

<mosaic_0001>
module attributes {stable_mosaic.version = 11 : i64} {
  func.func @_focal_loss_kernel(%arg0: i32, %arg1: memref<16x128xf32, #tpu.memory_space<vmem>>, %arg2: memref<16x128xf32, #tpu.memory_space<vmem>>, %arg3: memref<1x1xf32, #tpu.memory_space<vmem>>, %arg4: memref<8x128xf32, #tpu.memory_space<vmem>>) attributes {dimension_semantics = [#tpu.dimension_semantics<arbitrary>], iteration_bounds = array<i64: 1>, scalar_prefetch = 0 : i64, scratch_operands = 1 : i64, tpu.core_type = #tpu.core_type<tc>, window_params = [{transform_indices = @transform_0, window_bounds = array<i64: 16, 128>}, {transform_indices = @transform_1, window_bounds = array<i64: 16, 128>}, {pipeline_mode = #tpu.pipeline_mode<synchronous>, transform_indices = @transform_2, window_bounds = array<i64: 1, 1>}]} {
    %c0_i32 = arith.constant 0 : i32
    %0 = arith.cmpi eq, %arg0, %c0_i32 : i32
    %1 = arith.extui %0 : i1 to i32
    %c0_i32_0 = arith.constant 0 : i32
    %2 = arith.cmpi ne, %1, %c0_i32_0 : i32
    scf.if %2 {
      %cst_14 = arith.constant 0.000000e+00 : f32
      %30 = vector.broadcast %cst_14 : f32 to vector<8x128xf32>
      %c0_15 = arith.constant 0 : index
      %c0_16 = arith.constant 0 : index
      %31 = vector.load %arg4[%c0_15, %c0_16] : memref<8x128xf32, #tpu.memory_space<vmem>>, vector<8x128xf32>
      tpu.vector_store %arg4[%c0_15, %c0_16], %30 {strides = array<i32>} : memref<8x128xf32, #tpu.memory_space<vmem>>, vector<8x128xf32>,
    } else {
    }
    %c0 = arith.constant 0 : index
    %c0_1 = arith.constant 0 : index
    %3 = vector.load %arg1[%c0, %c0_1] : memref<16x128xf32, #tpu.memory_space<vmem>>, vector<16x128xf32>
    %c0_2 = arith.constant 0 : index
    %c0_3 = arith.constant 0 : index
    %4 = vector.load %arg2[%c0_2, %c0_3] : memref<16x128xf32, #tpu.memory_space<vmem>>, vector<16x128xf32>
    %cst = arith.constant 0.000000e+00 : f32
    %5 = vector.broadcast %cst : f32 to vector<16x128xf32>
    %6 = arith.maximumf %3, %5 : vector<16x128xf32>
    %7 = arith.mulf %3, %4 : vector<16x128xf32>
    %8 = arith.subf %6, %7 : vector<16x128xf32>
    %9 = math.absf %3 : vector<16x128xf32>
    %cst_4 = arith.constant 0.000000e+00 : f32
    %10 = vector.broadcast %cst_4 : f32 to vector<16x128xf32>
    %11 = arith.subf %10, %9 : vector<16x128xf32>
    %12 = math.exp %11 : vector<16x128xf32>
    %13 = math.log1p %12 : vector<16x128xf32>
    %14 = arith.addf %8, %13 : vector<16x128xf32>
    %cst_5 = arith.constant 0.000000e+00 : f32
    %15 = vector.broadcast %cst_5 : f32 to vector<16x128xf32>
    %16 = arith.subf %15, %14 : vector<16x128xf32>
    %17 = math.exp %16 : vector<16x128xf32>
    %cst_6 = arith.constant 1.000000e+00 : f32
    %18 = vector.broadcast %cst_6 : f32 to vector<16x128xf32>
    %19 = arith.subf %18, %17 : vector<16x128xf32>
    %20 = arith.mulf %19, %19 : vector<16x128xf32>
    %21 = arith.mulf %20, %14 : vector<16x128xf32>
    %c0_7 = arith.constant 0 : index
    %c0_8 = arith.constant 0 : index
    %22 = vector.load %arg4[%c0_7, %c0_8] : memref<8x128xf32, #tpu.memory_space<vmem>>, vector<8x128xf32>
    %23 = vector.shape_cast %21 : vector<16x128xf32> to vector<2x8x128xf32>
    %cst_9 = arith.constant dense<0.000000e+00> : vector<8x128xf32>
    %24 = vector.multi_reduction <add>, %23, %cst_9 [0] : vector<2x8x128xf32> to vector<8x128xf32>
    %25 = arith.addf %22, %24 : vector<8x128xf32>
    %c0_10 = arith.constant 0 : index
    %c0_11 = arith.constant 0 : index
    %26 = vector.load %arg4[%c0_10, %c0_11] : memref<8x128xf32, #tpu.memory_space<vmem>>, vector<8x128xf32>
    tpu.vector_store %arg4[%c0_10, %c0_11], %25 {strides = array<i32>} : memref<8x128xf32, #tpu.memory_space<vmem>>, vector<8x128xf32>,
    %c0_i32_12 = arith.constant 0 : i32
    %27 = arith.cmpi eq, %arg0, %c0_i32_12 : i32
    %28 = arith.extui %27 : i1 to i32
    %c0_i32_13 = arith.constant 0 : i32
    %29 = arith.cmpi ne, %28, %c0_i32_13 : i32
    scf.if %29 {
      %c0_14 = arith.constant 0 : index
      %c0_15 = arith.constant 0 : index
      %30 = vector.load %arg4[%c0_14, %c0_15] : memref<8x128xf32, #tpu.memory_space<vmem>>, vector<8x128xf32>
      %31 = vector.shape_cast %30 : vector<8x128xf32> to vector<1x8x128xf32>
      %cst_16 = arith.constant dense<0.000000e+00> : vector<1xf32>
      %32 = vector.multi_reduction <add>, %31, %cst_16 [1, 2] : vector<1x8x128xf32> to vector<1xf32>
      %33 = vector.shape_cast %32 : vector<1xf32> to vector<1x1x1xf32>
      %34 = vector.extract %33[0, 0, 0] : f32 from vector<1x1x1xf32>
      %35 = vector.broadcast %34 : f32 to vector<1x1xf32>
      %cst_17 = arith.constant 1.22070313E-4 : f32
      %36 = vector.broadcast %cst_17 : f32 to vector<1x1xf32>
      %37 = arith.mulf %35, %36 : vector<1x1xf32>
      %c0_18 = arith.constant 0 : index
      %c0_19 = arith.constant 0 : index
      %38 = vector.load %arg3[%c0_18, %c0_19] : memref<1x1xf32, #tpu.memory_space<vmem>>, vector<1x1xf32>
      tpu.vector_store %arg3[%c0_18, %c0_19], %37 {strides = array<i32>} : memref<1x1xf32, #tpu.memory_space<vmem>>, vector<1x1xf32>,
    } else {
    }
    return
  }
  func.func @transform_0(%arg0: i32) -> (i32, i32) {
    %c0_i32 = arith.constant 0 : i32
    %c0_i32_0 = arith.constant 0 : i32
    return %arg0, %c0_i32 : i32, i32
  }
  func.func @transform_1(%arg0: i32) -> (i32, i32) {
    %c0_i32 = arith.constant 0 : i32
    %c0_i32_0 = arith.constant 0 : i32
    return %arg0, %c0_i32 : i32, i32
  }
  func.func @transform_2(%arg0: i32) -> (i32, i32) {
    %c0_i32 = arith.constant 0 : i32
    %c0_i32_0 = arith.constant 0 : i32
    %c0_i32_1 = arith.constant 0 : i32
    return %c0_i32, %c0_i32_0 : i32, i32
  }
}

</mosaic_0001>

<bundles_post_ra>
// kernel: tpu_custom_call.1
= control target key start
LH: loop header
LB: loop body
LE: loop exit
PB: predicated region body
PF: predicated region fallthrough
CT: control target
= control target key end

     0   :  { %7 = vsyncpa [#allocation4], 0  ;;  %s264_s0 = inlined_call_operand.hbm [shape: f32[16,128], index: 0, kind: input, shape index: {}]   ;;  %s265_s1 = inlined_call_operand.hbm [shape: f32[16,128], index: 1, kind: input, shape index: {}]   ;;  %s266_s2 = inlined_call_operand.hbm [shape: f32[1,1], index: 2, kind: output, shape index: {}]  }
   0x1   :  { %8 = vsyncpa [#allocation7], 0 }
   0x2   :  { %9 = vsyncpa [#allocation5], 0  ;;  %s14_s11 = sshll.u32 %s264_s0, 4  ;;  %s235_s12 = smov [#allocation3]   ;;  %s15_s11 = int_to_ptr.hbm [resolvable:$true] %s14_s11 }
   0x3   :  { %s16_s13 = sshll.u32 %s235_s12, 4  ;;  %s27_s16 = sshll.u32 %s265_s1, 4  ;;  %s17_s13 = int_to_ptr.vmem [resolvable:$true] %s16_s13  ;;  %s28_s16 = int_to_ptr.hbm [resolvable:$true] %s27_s16 }
   0x4   :  { %s236_s17 = smov 128   ;;  %s237_s18 = smov 8  }
   0x5   :  { %22 = dma.hbm_to_vmem [thread:$0]  %s15_s11, 256, %s17_s13, [#allocation4], %s236_s17, %s236_s17, %s237_s18  }
   0x6   :  { %s238_s19 = smov [#allocation6]  }
   0x7   :  { %s29_s20 = sshll.u32 %s238_s19, 4  ;;  %s30_s20 = int_to_ptr.vmem [resolvable:$true] %s29_s20 }
   0x8   :  { %35 = dma.hbm_to_vmem [thread:$0]  %s28_s16, 256, %s30_s20, [#allocation7], %s236_s17, %s236_s17, %s237_s18  }
   0x9   :  { %229 = dma.done.wait [#allocation4], 256  }
   0xa   :  { %230 = vsyncadd [#allocation4], 4294967040 }
   0xb   :  { %231 = dma.done.wait [#allocation7], 256  }
   0xc   :  { %232 = vsyncadd [#allocation7], 4294967040  ;;  %v49_v0 = vld [vmem:[#allocation3] sm:$0xff]  ;;  %v50_v1 = vld [vmem:[#allocation3 + $0x8] sm:$0xff]  ;;  %s239_s0 = smov [#allocation8]   ;;  %s127_s23 = sshll.u32 %s266_s2, 4  ;;  %s128_s23 = int_to_ptr.hbm [resolvable:$true] %s127_s23 }
   0xd   :  { %v59_v2 = vand.u32 2147483647, %v49_v0  ;;  %v60_v3 = vand.u32 2147483647, %v50_v1  ;;  %v51_v12 = vld [vmem:[#allocation6] sm:$0xff]  ;;  %v52_v15 = vld [vmem:[#allocation6 + $0x8] sm:$0xff] }
   0xe   :  { %v53_v17 = vmax.f32 %v49_v0, 0.0  ;;  %v55_v18 = vmul.f32 %v51_v12, %v49_v0  ;;  %v54_v21 = vmax.f32 %v50_v1, 0.0  ;;  %v56_v22 = vmul.f32 %v52_v15, %v50_v1  ;;  %s125_s1 = sshll.u32 %s239_s0, 4  ;;  %s126_s1 = int_to_ptr.vmem [resolvable:$true] %s125_s1 }
   0xf   :  { %v61_v4 = vsub.f32 0.0, %v59_v2  ;;  %v62_v5 = vsub.f32 0.0, %v60_v3  ;;  %vm118_vm2 = vcmask 0  }
  0x10   :  { %v57_v26 = vsub.f32 %v53_v17, %v55_v18  ;;  %v58_v29 = vsub.f32 %v54_v21, %v56_v22 }
  0x11   :  { %v63_v6 = vmul.f32 1.442695, %v61_v4  ;;  %v65_v7 = vmul.f32 1.442695, %v62_v5 }
  0x13   :  { %145 = vpow2.f32 %v63_v6 }
  0x14   :  { %147 = vpow2.f32 %v65_v7 }
  0x19   :  { %v146_v8 = vpop.eup %145 }
  0x1a   :  { %v148_v9 = vpop.eup %147  ;;  %v67_v10 = vadd.f32 1.0, %v146_v8  ;;  %v70_v11 = vmul.f32 -0.5, %v146_v8  ;;  %v73_v19 = vand.u32 2147483647, %v146_v8 }
  0x1b   :  { %v76_v13 = vadd.f32 1.0, %v148_v9  ;;  %v79_v14 = vmul.f32 -0.5, %v148_v9  ;;  %v82_v23 = vand.u32 2147483647, %v148_v9 }
  0x1c   :  { %149 = vlog2.f32 %v67_v10  ;;  %v71_v16 = vadd.f32 1.0, %v70_v11  ;;  %vm74_vm0 = vcmp.lt.f32.partialorder %v73_v19, 0.0004427343 }
  0x1d   :  { %151 = vlog2.f32 %v76_v13  ;;  %v80_v20 = vadd.f32 1.0, %v79_v14  ;;  %vm83_vm1 = vcmp.lt.f32.partialorder %v82_v23, 0.0004427343 }
  0x1e   :  { %v72_v24 = vmul.f32 %v146_v8, %v71_v16 }
  0x1f   :  { %v81_v27 = vmul.f32 %v148_v9, %v80_v20 }
  0x22   :  { %v150_v25 = vpop.eup %149 }
  0x23   :  { %v152_v28 = vpop.eup %151  ;;  %v69_v30 = vmul.f32 0.6931472, %v150_v25 }
  0x24   :  { %v78_v31 = vmul.f32 0.6931472, %v152_v28 }
  0x25   :  { %v75_v32 = vsel %vm74_vm0, %v72_v24, %v69_v30 }
  0x26   :  { %v84_v33 = vsel %vm83_vm1, %v81_v27, %v78_v31  ;;  %v85_v34 = vadd.f32 %v75_v32, %v57_v26 }
  0x27   :  { %v86_v35 = vadd.f32 %v84_v33, %v58_v29 }
  0x28   :  { %v87_v36 = vsub.f32 0.0, %v85_v34 }
  0x29   :  { %v88_v37 = vsub.f32 0.0, %v86_v35 }
  0x2a   :  { %v89_v38 = vmul.f32 1.442695, %v87_v36 }
  0x2b   :  { %v91_v39 = vmul.f32 1.442695, %v88_v37 }
  0x2c   :  { %153 = vpow2.f32 %v89_v38 }
  0x2d   :  { %155 = vpow2.f32 %v91_v39 }
  0x32   :  { %v154_v40 = vpop.eup %153 }
  0x33   :  { %v156_v41 = vpop.eup %155  ;;  %v93_v42 = vsub.f32 1.0, %v154_v40 }
  0x34   :  { %v94_v43 = vsub.f32 1.0, %v156_v41 }
  0x35   :  { %v95_v44 = vmul.f32 %v93_v42, %v93_v42 }
  0x36   :  { %v96_v45 = vmul.f32 %v94_v43, %v94_v43 }
  0x37   :  { %v97_v46 = vmul.f32 %v95_v44, %v85_v34 }
  0x38   :  { %v98_v47 = vmul.f32 %v96_v45, %v86_v35 }
  0x3a   :  { %v100_v48 = vadd.f32 %v98_v47, %v97_v46 }
  0x3c   :  { %107 = vadd.xlane.f32.xlu0 %v100_v48 }
  0xaf   :  { %v108_v49 = vpop.xlane.xlu0 %107 }
  0xb0   :  { %v109_v50 = vrot.slane %v108_v49, 4 }
  0xb2   :  { %v110_v51 = vadd.f32 %v109_v50, %v108_v49 }
  0xb4   :  { %v111_v52 = vrot.slane %v110_v51, 2 }
  0xb6   :  { %v112_v53 = vadd.f32 %v111_v52, %v110_v51 }
  0xb8   :  { %v113_v54 = vrot.slane %v112_v53, 1 }
  0xba   :  { %v114_v55 = vadd.f32 %v113_v54, %v112_v53 }
  0xbc   :  { %138 = vpush %v114_v55 }
  0xed   :  { %s139_s24 = spop %138 }
  0xee   :  { %v116_v56 = vstv %s139_s24 }
  0xef   :  { %v117_v57 = vmul.f32 0.00012207031, %v116_v56 }
  0xf1   :  { %119 = vst.msk [vmem:[#allocation8] sm:$0x1] %vm118_vm2, %v117_v57 }
  0xf2   :  { %130 = dma.vmem_to_hbm [thread:$0]  %s126_s1, 16, %s128_s23, [#allocation5]  }
  0xf3   :  { %233 = dma.done.wait [#allocation5], 16  }
  0xf4   :  { %234 = vsyncadd [#allocation5], 4294967280 }
  0xf5   :  { %135 = vsyncpa [#allocation4], 1 }
  0xf6   :  { %136 = vsyncpa [#allocation7], 1 }
  0xf7   :  { %137 = vsyncpa [#allocation5], 1 }

</bundles_post_ra>
